<compile_context>
chip_gen: v5e
topology: v5e:2x2
jax: 0.10.0
libtpu: 0.0.40
codegen_flags: <defaults>
</compile_context>

<pallas_src>
import numpy as np
import jax
import jax.numpy as jnp
from jax.experimental import pallas as pl
from jax.experimental.pallas import tpu as pltpu

# ----- small, module-consistent sizes -----
B = 2            # batch
D = 8            # sequence length (data_config.residues = None -> len(full_seq))
A = 5            # alphabet_size
H = A + 1        # Embedder hidden_dim
F = D * H        # flattened embedding dim fed to the sampled model
M = 32           # random Fourier features of the GP sample

assert H % 2 == 0, "GaussianFourierProjection sin|cos lane split requires even hidden_dim"

TWO_PI = 2.0 * float(np.pi)
RFF_SCALE = float(np.sqrt(2.0 / M))

NOH = D * A          # 40 one-hot lanes (one per (position, letter) pair)
KDIM = 48            # contraction width: H (time lanes) + NOH (one-hot lanes) = 46 -> pad 48

# packed parameter slab layout: one (NROWS, 128) f32 array, everything starts at lane 0
ROW_WROW = 0         # GFP weights * 2pi duplicated [W, W], lanes 0:H (rest 0)
ROW_AMOD = 1         # per-lane alphabet index for the one-hot lanes, -1 elsewhere
ROW_C0 = 2           # b_emb @ OmegaSum + b_rff, lanes 0:M
ROW_WRFF = 3         # RFF output weights, lanes 0:M
ROW_E = 8            # rows 8:16  -> (D, KDIM) 0/1 token lane-expansion matrix
ROW_R = 16           # rows 16:64 -> (KDIM, M) fused projection [OmegaSum ; G ; 0]
NROWS = ROW_R + KDIM  # 64


# -------------------- fused Pallas kernel --------------------

def fused_kernel(seq_ref, t_ref, p_ref, out_ref):
    """Whole forward pass in one invocation (no grid).

    seq_ref: (B, D) int32 tokens
    t_ref:   (B, 1) f32 times
    p_ref:   (NROWS, 128) packed parameter slab (layout above)
    out_ref: (B, 1) result
    """
    # static slices of the packed slab (one DMA'd operand)
    wrow = p_ref[ROW_WROW:ROW_WROW + 1, 0:KDIM]       # (1, KDIM)
    amod = p_ref[ROW_AMOD:ROW_AMOD + 1, 0:KDIM]       # (1, KDIM)
    c0 = p_ref[ROW_C0:ROW_C0 + 1, 0:M]                # (1, M)
    wrff = p_ref[ROW_WRFF:ROW_WRFF + 1, 0:M]          # (1, M)
    expand = p_ref[ROW_E:ROW_E + D, 0:KDIM]           # (D, KDIM) 0/1
    rproj = p_ref[ROW_R:ROW_R + KDIM, 0:M]            # (KDIM, M)

    # lane-expand tokens: seq_exp[b, H + d*A + a] = seq[b, d] on one-hot lanes, 0 elsewhere.
    # Exact: small non-negative ints times a 0/1 matrix, exactly one term per lane.
    seqf = seq_ref[...].astype(jnp.float32)                               # (B, D)
    seq_exp = jnp.dot(seqf, expand, preferred_element_type=jnp.float32)   # (B, KDIM)

    lane = jax.lax.broadcasted_iota(jnp.int32, (B, KDIM), 1)
    arg = t_ref[...] * wrow                                               # (B, KDIM); 2pi folded into wrow
    onehot = jnp.where(seq_exp == amod, 1.0, 0.0)                         # exact equality on small ints
    # lanes 0:H/2 = sin(t*W*2pi), H/2:H = cos(t*W*2pi), H: = one-hot of (position, letter)
    lhs = jnp.where(lane < (H // 2), jnp.sin(arg),
                    jnp.where(lane < H, jnp.cos(arg), onehot))            # (B, KDIM)

    # single fused projection: time-embed @ OmegaSum + sum_d G[d, seq[:,d]]  (+ c0)
    proj = jnp.dot(lhs, rproj, preferred_element_type=jnp.float32) + c0   # (B, M)
    z = RFF_SCALE * jnp.cos(proj)
    # final (B, M) @ (M, 1) as VPU mul + cross-lane reduce (avoid N=1 MXU matmul)
    out_ref[...] = jnp.sum(z * wrff, axis=-1, keepdims=True)              # (B, 1)


# -------------------- one-time parameter preparation (hoisted glue) --------------------

def prepare_params(W_gfp, W_emb, b_emb, Omega, b_rff, w_rff):
    """Fold the embedding + flatten + projection algebra into one packed (NROWS,128) slab."""
    hp = jax.lax.Precision.HIGHEST
    wembT = W_emb.T                                        # (A, H): y = x @ W.T + b
    om3 = Omega.reshape(D, H, M)                           # per-position slabs of Omega
    omega_sum = om3.sum(axis=0)                            # (H, M): applies to time_embed + bias
    g = jnp.einsum('ah,dhm->dam', wembT, om3, precision=hp)  # (D, A, M): embedding already projected
    c0 = jnp.dot(b_emb, omega_sum, precision=hp) + b_rff   # (M,): bias + RFF phase folded together

    rproj = jnp.zeros((KDIM, M), jnp.float32)
    rproj = rproj.at[0:H, :].set(omega_sum)
    rproj = rproj.at[H:H + NOH, :].set(g.reshape(NOH, M))

    wrow = jnp.zeros((KDIM,), jnp.float32)
    wrow = wrow.at[0:H // 2].set(W_gfp * TWO_PI)
    wrow = wrow.at[H // 2:H].set(W_gfp * TWO_PI)

    amod = np.full((KDIM,), -1.0, np.float32)              # -1 never matches a token >= 0
    expand = np.zeros((D, KDIM), np.float32)
    for l in range(H, H + NOH):
        amod[l] = float((l - H) % A)
        expand[(l - H) // A, l] = 1.0

    slab = jnp.zeros((NROWS, 128), jnp.float32)
    slab = slab.at[ROW_WROW, 0:KDIM].set(wrow)
    slab = slab.at[ROW_AMOD, 0:KDIM].set(jnp.asarray(amod))
    slab = slab.at[ROW_C0, 0:M].set(c0)
    slab = slab.at[ROW_WRFF, 0:M].set(w_rff)
    slab = slab.at[ROW_E:ROW_E + D, 0:KDIM].set(jnp.asarray(expand))
    slab = slab.at[ROW_R:ROW_R + KDIM, 0:M].set(rproj)
    return slab


# -------------------- wrapper --------------------

@jax.jit
def sampled_deterministic_model(seq, t, param_slab):
    """seq: (B, D) int32, t: (B,) f32, param_slab: packed params -> (B, 1, 1) f32."""
    t2 = t.reshape(B, 1).astype(jnp.float32)
    out = pl.pallas_call(
        fused_kernel,
        out_shape=jax.ShapeDtypeStruct((B, 1), jnp.float32),
        compiler_params=pltpu.CompilerParams(vmem_limit_bytes=4 * 1024 * 1024),
    )(seq, t2, param_slab)
    # unsqueeze(1) of the original module: sampled model acts on the last dim only
    return out.reshape(B, 1, 1)


# -------------------- pure-JAX reference (correctness check) --------------------

def reference(seq, t, params):
    W_gfp, W_emb, b_emb, Omega, b_rff, w_rff = params
    oh = jax.nn.one_hot(seq, A, dtype=jnp.float32)                        # (B, D, A)
    feat = oh @ W_emb.T + b_emb                                           # (B, D, H)
    x_proj = t[:, None] * W_gfp[None, :] * TWO_PI                         # (B, H//2)
    te = jnp.concatenate([jnp.sin(x_proj), jnp.cos(x_proj)], axis=-1)     # (B, H)
    x = feat + te[:, None, :]
    x = x.reshape(B, F)[:, None, :]                                       # (B, 1, F)
    proj = x @ Omega + b_rff                                              # (B, 1, M)
    z = RFF_SCALE * jnp.cos(proj)
    return z @ w_rff[:, None]                                             # (B, 1, 1)


# -------------------- main --------------------

if __name__ == "__main__":
    key = jax.random.PRNGKey(0)
    k_seq, k_t, k_gfp, k_w, k_b, k_om, k_brff, k_wrff = jax.random.split(key, 8)

    # inputs
    seq = jax.random.randint(k_seq, (B, D), 0, A, dtype=jnp.int32)        # (B, D) tokens
    t = jax.random.uniform(k_t, (B,), dtype=jnp.float32)                  # (B,)   times

    # deterministic parameter init (shapes follow the module's __init__)
    W_gfp = jax.random.normal(k_gfp, (H // 2,), dtype=jnp.float32) * 30.0     # GFP (non-trainable)
    W_emb = jax.random.normal(k_w, (H, A), dtype=jnp.float32) * 0.2           # nn.Linear(A, H).weight
    b_emb = jax.random.normal(k_b, (H,), dtype=jnp.float32) * 0.1             # nn.Linear(A, H).bias
    # TODO(synk): the real `sampled_model` is an externally supplied GP pathwise sample;
    # it is synthesized here as a deterministic random-Fourier-feature sample.
    Omega = jax.random.normal(k_om, (F, M), dtype=jnp.float32) * 0.3
    b_rff = jax.random.uniform(k_brff, (M,), dtype=jnp.float32) * TWO_PI
    w_rff = jax.random.normal(k_wrff, (M,), dtype=jnp.float32)

    raw_params = (W_gfp, W_emb, b_emb, Omega, b_rff, w_rff)
    param_slab = jax.block_until_ready(prepare_params(*raw_params))       # hoisted, one-time

    out = jax.block_until_ready(sampled_deterministic_model(seq, t, param_slab))
    ref = jax.block_until_ready(reference(seq, t, raw_params))

    assert out.shape == (B, 1, 1), out.shape
    np.testing.assert_allclose(np.asarray(out), np.asarray(ref), rtol=1e-4, atol=1e-4)

    print("KERNEL_OK")
</pallas_src>

<mosaic_0001>
module attributes {stable_mosaic.version = 11 : i64} {
  func.func @fused_kernel(%arg0: memref<2x8xi32, #tpu.memory_space<vmem>>, %arg1: memref<2x1xf32, #tpu.memory_space<vmem>>, %arg2: memref<64x128xf32, #tpu.memory_space<vmem>>, %arg3: memref<2x1xf32, #tpu.memory_space<vmem>>) attributes {dimension_semantics = [], scalar_prefetch = 0 : i64, scratch_operands = 0 : i64, tpu.core_type = #tpu.core_type<tc>} {
    %c0 = arith.constant 0 : index
    %c0_0 = arith.constant 0 : index
    %0 = vector.load %arg2[%c0, %c0_0] : memref<64x128xf32, #tpu.memory_space<vmem>>, vector<1x48xf32>
    %c1 = arith.constant 1 : index
    %c0_1 = arith.constant 0 : index
    %1 = vector.load %arg2[%c1, %c0_1] : memref<64x128xf32, #tpu.memory_space<vmem>>, vector<1x48xf32>
    %c2 = arith.constant 2 : index
    %c0_2 = arith.constant 0 : index
    %2 = vector.load %arg2[%c2, %c0_2] : memref<64x128xf32, #tpu.memory_space<vmem>>, vector<1x32xf32>
    %c3 = arith.constant 3 : index
    %c0_3 = arith.constant 0 : index
    %3 = vector.load %arg2[%c3, %c0_3] : memref<64x128xf32, #tpu.memory_space<vmem>>, vector<1x32xf32>
    %c8 = arith.constant 8 : index
    %c0_4 = arith.constant 0 : index
    %4 = vector.load %arg2[%c8, %c0_4] : memref<64x128xf32, #tpu.memory_space<vmem>>, vector<8x48xf32>
    %c16 = arith.constant 16 : index
    %c0_5 = arith.constant 0 : index
    %5 = vector.load %arg2[%c16, %c0_5] : memref<64x128xf32, #tpu.memory_space<vmem>>, vector<48x32xf32>
    %c0_6 = arith.constant 0 : index
    %c0_7 = arith.constant 0 : index
    %6 = vector.load %arg0[%c0_6, %c0_7] : memref<2x8xi32, #tpu.memory_space<vmem>>, vector<2x8xi32>
    %7 = arith.sitofp %6 : vector<2x8xi32> to vector<2x8xf32>
    %cst = arith.constant dense<0.000000e+00> : vector<2x48xf32>
    %8 = tpu.matmul %7, %4, %cst {dimension_numbers = #tpu.dot_dimension_numbers<[1], [0], [0], [1], [0, 0, 1, 1], [], []>} : vector<2x8xf32>, vector<8x48xf32>, vector<2x48xf32> -> vector<2x48xf32>
    %9 = tpu.iota {dimensions = array<i32: 1>} : vector<2x48xi32>
    %c0_8 = arith.constant 0 : index
    %c0_9 = arith.constant 0 : index
    %10 = vector.load %arg1[%c0_8, %c0_9] : memref<2x1xf32, #tpu.memory_space<vmem>>, vector<2x1xf32>
    %11 = vector.broadcast %10 : vector<2x1xf32> to vector<2x48xf32>
    %12 = vector.broadcast %0 : vector<1x48xf32> to vector<2x48xf32>
    %13 = arith.mulf %11, %12 : vector<2x48xf32>
    %14 = vector.broadcast %1 : vector<1x48xf32> to vector<2x48xf32>
    %15 = arith.cmpf oeq, %8, %14 : vector<2x48xf32>
    %cst_10 = arith.constant 1.000000e+00 : f32
    %cst_11 = arith.constant 0.000000e+00 : f32
    %16 = vector.broadcast %cst_10 : f32 to vector<2x48xf32>
    %17 = vector.broadcast %cst_11 : f32 to vector<2x48xf32>
    %18 = arith.select %15, %16, %17 : vector<2x48xi1>, vector<2x48xf32>
    %c3_i32 = arith.constant 3 : i32
    %19 = vector.broadcast %c3_i32 : i32 to vector<2x48xi32>
    %20 = arith.cmpi slt, %9, %19 : vector<2x48xi32>
    %21 = math.sin %13 : vector<2x48xf32>
    %c6_i32 = arith.constant 6 : i32
    %22 = vector.broadcast %c6_i32 : i32 to vector<2x48xi32>
    %23 = arith.cmpi slt, %9, %22 : vector<2x48xi32>
    %24 = math.cos %13 : vector<2x48xf32>
    %25 = arith.select %23, %24, %18 : vector<2x48xi1>, vector<2x48xf32>
    %26 = arith.select %20, %21, %25 : vector<2x48xi1>, vector<2x48xf32>
    %cst_12 = arith.constant dense<0.000000e+00> : vector<2x32xf32>
    %27 = tpu.matmul %26, %5, %cst_12 {dimension_numbers = #tpu.dot_dimension_numbers<[1], [0], [0], [1], [0, 0, 1, 1], [], []>} : vector<2x48xf32>, vector<48x32xf32>, vector<2x32xf32> -> vector<2x32xf32>
    %28 = vector.broadcast %2 : vector<1x32xf32> to vector<2x32xf32>
    %29 = arith.addf %27, %28 : vector<2x32xf32>
    %30 = math.cos %29 : vector<2x32xf32>
    %cst_13 = arith.constant 2.500000e-01 : f32
    %31 = vector.broadcast %cst_13 : f32 to vector<2x32xf32>
    %32 = arith.mulf %31, %30 : vector<2x32xf32>
    %33 = vector.broadcast %3 : vector<1x32xf32> to vector<2x32xf32>
    %34 = arith.mulf %32, %33 : vector<2x32xf32>
    %cst_14 = arith.constant dense<0.000000e+00> : vector<2xf32>
    %35 = vector.multi_reduction <add>, %34, %cst_14 [1] : vector<2x32xf32> to vector<2xf32>
    %36 = vector.shape_cast %35 : vector<2xf32> to vector<2x1xf32>
    %c0_15 = arith.constant 0 : index
    %c0_16 = arith.constant 0 : index
    %37 = vector.load %arg3[%c0_15, %c0_16] : memref<2x1xf32, #tpu.memory_space<vmem>>, vector<2x1xf32>
    tpu.vector_store %arg3[%c0_15, %c0_16], %36 {strides = array<i32>} : memref<2x1xf32, #tpu.memory_space<vmem>>, vector<2x1xf32>,
    return
  }
}

</mosaic_0001>

<bundles_post_ra>
// kernel: sampled_deterministic_model.1
= control target key start
LH: loop header
LB: loop body
LE: loop exit
PB: predicated region body
PF: predicated region fallthrough
CT: control target
= control target key end

     0   :  { %8 = vsyncpa [#allocation3], 0  ;;  %s639_s15 = smov [#allocation2]   ;;  %s640_s17 = smov 128   ;;  %s821_s0 = inlined_call_operand.vmem [shape: s32[2,8], index: 0, kind: input, shape index: {}]   ;;  %s822_s1 = inlined_call_operand.vmem [shape: f32[2,1], index: 1, kind: input, shape index: {}]   ;;  %s823_s2 = inlined_call_operand.hbm [shape: f32[64,128], index: 2, kind: input, shape index: {}]   ;;  %s824_s3 = inlined_call_operand.vmem [shape: f32[2,1], index: 3, kind: output, shape index: {}]  }
   0x1   :  { %s17_s14 = sshll.u32 %s823_s2, 4  ;;  %s19_s16 = sshll.u32 %s639_s15, 4  ;;  %s18_s14 = int_to_ptr.hbm [resolvable:$true] %s17_s14  ;;  %s20_s16 = int_to_ptr.vmem [resolvable:$true] %s19_s16 }
   0x2   :  { %s641_s18 = smov 8  }
   0x3   :  { %25 = dma.hbm_to_vmem [thread:$0]  %s18_s14, 1024, %s20_s16, [#allocation3], %s640_s17, %s640_s17, %s641_s18  }
   0x4   :  { %637 = dma.done.wait [#allocation3], 1024  }
   0x5   :  { %638 = vsyncadd [#allocation3], 4294966272  ;;  %v642_v0 = vmov 0   ;;  %v69_v1 = vld [vmem:[%s822_s1] sm:$0x3]  ;;  %v34_v2 = vld [vmem:[#allocation2 + $0x8] sm:$0xff] }
   0x6   :  { %608 = vset.pattern.permute.xlu0 %v642_v0  ;;  %v41_v3 = vld [vmem:[%s821_s0] sm:$0x3]  ;;  %vm43_vm0 = vcmask 64512   ;;  %62 = vmatpush.msra.mxu0 %v34_v2  ;;  %v643_v19 = vmov 683565275  }
   0x7   :  { %72 = vperm.xlu0 %608, %v69_v1   ;;  %v42_v4 = vcvt.s32.f32 %v41_v3  ;;  %v609_v5 = vld [vmem:[#allocation2] ss:$0 sm:$0xff]  ;;  %v644_v21 = vmov 2475754826   ;;  %v645_v24 = vmov 2131351028  }
   0x8   :  { %v646_v27 = vmov 2102212464   ;;  %v647_v30 = vmov 920167782   ;;  %v648_v33 = vmov 1326507024  }
   0x9   :  { %586 = vmatmul.msk.f32.vlgmr.msra.gmra.mxu0 %vm43_vm0, %v42_v4 }
  0x79   :  { %v73_v6 = vpop.permute.xlu0 %72 }
  0x7a   :  { %v680_v7 = vmul.f32 %v609_v5, %v73_v6 }
  0x7c   :  { %v84_v8 = vand.u32 2139095040, %v680_v7  ;;  %v81_v11 = vand.u32 2147483647, %v680_v7  ;;  %vm83_vm13 = vcmp.lt.s32.totalorder %v680_v7, 0 }
  0x7e   :  { %v85_v9 = vshrl.u32 %v84_v8, 23  ;;  %v88_v13 = vand.u32 8388607, %v81_v11  ;;  %vm82_vm14 = vcmp.le.f32.partialorder %v81_v11, 0.7853982 }
  0x80   :  { %v587_v10 = vadd.s32 4294967169, %v85_v9  ;;  %v89_v17 = vor.u32 8388608, %v88_v13 }
  0x82   :  { %v91_v12 = vadd.s32 1, %v587_v10  ;;  %v706_v40 = vshll.u32 %v89_v17, 8 }
  0x84   :  { %vm92_vm1 = vcmp.gt.s32.totalorder %v91_v12, 0  ;;  %v130_v49 = vand.u32 65535, %v706_v40  ;;  %v131_v50 = vshrl.u32 %v706_v40, 16 }
  0x85   :  { %v93_v14 = vsel %vm92_vm1, %v91_v12, 0 }
  0x86   :  { %v95_v15 = vand.u32 31, %v93_v14  ;;  %v688_v18 = vshrl.u32 %v93_v14, 5 }
  0x88   :  { %v686_v16 = vsub.s32 32, %v95_v15  ;;  %v98_v20 = vshll.u32 %v643_v19, %v95_v15  ;;  %v101_v22 = vshll.u32 %v644_v21, %v95_v15  ;;  %v104_v26 = vshll.u32 %v645_v24, %v95_v15 }
  0x89   :  { %v107_v29 = vshll.u32 %v646_v27, %v95_v15  ;;  %v110_v32 = vshll.u32 %v647_v30, %v95_v15  ;;  %vm113_vm2 = vcmp.lt.s32.totalorder %v688_v18, 1  ;;  %vm116_vm3 = vcmp.lt.s32.totalorder %v688_v18, 4 }
  0x8a   :  { %v99_v23 = vshrl.u32 %v644_v21, %v686_v16  ;;  %v102_v25 = vshrl.u32 %v645_v24, %v686_v16  ;;  %v105_v28 = vshrl.u32 %v646_v27, %v686_v16  ;;  %v108_v31 = vshrl.u32 %v647_v30, %v686_v16 }
  0x8b   :  { %v111_v34 = vshrl.u32 %v648_v33, %v686_v16  ;;  %vm115_vm4 = vcmp.lt.s32.totalorder %v688_v18, 3  ;;  %vm114_vm5 = vcmp.lt.s32.totalorder %v688_v18, 2  ;;  %v97_v14 = vshrl.u32 %v643_v19, %v686_v16 }
  0x8c   :  { %v100_v35 = vor.u32 %v99_v23, %v98_v20  ;;  %v103_v36 = vor.u32 %v102_v25, %v101_v22  ;;  %v106_v37 = vor.u32 %v105_v28, %v104_v26  ;;  %v109_v38 = vor.u32 %v108_v31, %v107_v29 }
  0x8d   :  { %v112_v39 = vor.u32 %v111_v34, %v110_v32 }
  0x8e   :  { %v121_v41 = vsel %vm113_vm2, %v100_v35, %v103_v36  ;;  %v125_v42 = vsel %vm113_vm2, %v103_v36, %v106_v37  ;;  %v122_v43 = vsel %vm116_vm3, %v109_v38, 920167782  ;;  %v118_v10 = vsel %vm116_vm3, %v106_v37, 2102212464 }
  0x8f   :  { %v126_v44 = vsel %vm116_vm3, %v112_v39, 1326507024  ;;  %v123_v45 = vsel %vm115_vm4, %v106_v37, %v122_v43  ;;  %v117_v25 = vsel %vm113_vm2, %v97_v14, %v100_v35  ;;  %v119_v26 = vsel %vm115_vm4, %v103_v36, %v118_v10 }
  0x90   :  { %v127_v46 = vsel %vm115_vm4, %v109_v38, %v126_v44  ;;  %v124_v47 = vsel %vm114_vm5, %v121_v41, %v123_v45  ;;  %v120_v16 = vsel %vm114_vm5, %v117_v25, %v119_v26  ;;  %v40_v44 = vld [vmem:[#allocation2 + $0x38] sm:$0xff]  ;;  %v39_v45 = vld [vmem:[#allocation2 + $0x30] sm:$0xff] }
  0x91   :  { %v128_v48 = vsel %vm114_vm5, %v125_v42, %v127_v46  ;;  %v154_v53 = vand.u32 65535, %v124_v47  ;;  %v155_v54 = vshrl.u32 %v124_v47, 16  ;;  %v174_v41 = vmul.u32 %v706_v40, %v120_v16  ;;  %408 = vmatpush.msra.mxu1 %v40_v44  ;;  %v38_v46 = vld [vmem:[#allocation2 + $0x28] sm:$0xff] }
  0x92   :  { %v132_v51 = vand.u32 65535, %v128_v48  ;;  %v133_v52 = vshrl.u32 %v128_v48, 16 }
  0x93   :  { %v157_v57 = vmul.u32 %v155_v54, %v130_v49  ;;  %v158_v58 = vmul.u32 %v154_v53, %v131_v50  ;;  %v156_v62 = vmul.u32 %v154_v53, %v130_v49  ;;  %v159_v3 = vmul.u32 %v155_v54, %v131_v50  ;;  %409 = vmatpush.msra.mxu1 %v39_v45 }
  0x94   :  { %v135_v55 = vmul.u32 %v133_v52, %v130_v49  ;;  %v136_v56 = vmul.u32 %v132_v51, %v131_v50  ;;  %v134_v59 = vmul.u32 %v132_v51, %v130_v49  ;;  %v137_v61 = vmul.u32 %v133_v52, %v131_v50 }
  0x95   :  { %v160_v63 = vshll.u32 %v157_v57, 16  ;;  %v162_v5 = vshll.u32 %v158_v58, 16  ;;  %v161_v22 = vshrl.u32 %v157_v57, 16  ;;  %v163_v31 = vshrl.u32 %v158_v58, 16  ;;  %410 = vmatpush.msra.mxu1 %v38_v46  ;;  %v37_v58 = vld [vmem:[#allocation2 + $0x20] sm:$0xff] }
  0x96   :  { %v138_v60 = vshll.u32 %v135_v55, 16  ;;  %v140_v1 = vshll.u32 %v136_v56, 16  ;;  %v139_v15 = vshrl.u32 %v135_v55, 16  ;;  %v141_v28 = vshrl.u32 %v136_v56, 16 }
  0x97   :  { %vm164_vm7 = vc.u32 %v156_v62, %v160_v63  ;;  %v166_v6 = vadd.s32 %v160_v63, %v156_v62  ;;  %411 = vmatpush.msra.mxu1 %v37_v58  ;;  %v35_v62 = vld [vmem:[#allocation2 + $0x10] sm:$0xff] }
  0x98   :  { %vm142_vm6 = vc.u32 %v134_v59, %v138_v60  ;;  %v144_v2 = vadd.s32 %v138_v60, %v134_v59  ;;  %v165_v9 = vsel %vm164_vm7, 1, %v642_v0  ;;  %vm224_vm7 = vweird.f32 %v680_v7 }
  0x99   :  { %v143_v4 = vsel %vm142_vm6, 1, %v642_v0  ;;  %v167_v13 = vadd.s32 %v165_v9, %v159_v3  ;;  %vm168_vm9 = vc.u32 %v166_v6, %v162_v5  ;;  %v170_v37 = vadd.s32 %v166_v6, %v162_v5 }
  0x9a   :  { %v145_v8 = vadd.s32 %v143_v4, %v137_v61  ;;  %vm146_vm8 = vc.u32 %v144_v2, %v140_v1  ;;  %v169_v20 = vsel %vm168_vm9, 1, %v642_v0  ;;  %v36_v61 = vld [vmem:[#allocation2 + $0x18] sm:$0xff]  ;;  %vm394_vm9 = vcmask 392192  }
  0x9b   :  { %v147_v12 = vsel %vm146_vm8, 1, %v642_v0  ;;  %v171_v23 = vadd.s32 %v169_v20, %v167_v13  ;;  %412 = vmatpush.msra.mxu1 %v36_v61 }
  0x9c   :  { %v149_v17 = vadd.s32 %v147_v12, %v145_v8 }
  0x9d   :  { %v172_v32 = vadd.s32 %v171_v23, %v161_v22  ;;  %413 = vmatpush.msra.mxu1 %v35_v62  ;;  %v610_v23 = vld [vmem:[#allocation2 + $0x1] ss:$0 sm:$0xff] }
  0x9e   :  { %v150_v29 = vadd.s32 %v149_v17, %v139_v15 }
  0x9f   :  { %v173_v38 = vadd.s32 %v172_v32, %v163_v31 }
  0xa0   :  { %v151_v34 = vadd.s32 %v150_v29, %v141_v28  ;;  %v64_v28 = vpop.f32.mrf.mxu0  ;;  %v67_v29 = vlaneseq }
  0xa1   :  { %v177_v39 = vadd.s32 1, %v173_v38  ;;  %vm78_vm15 = vcmp.eq.f32.partialorder %v64_v28, %v610_v23 }
  0xa2   :  { %vm176_vm10 = vc.u32 %v151_v34, %v170_v37  ;;  %v175_v40 = vadd.s32 %v170_v37, %v151_v34 }
  0xa3   :  { %v178_v42 = vsel %vm176_vm10, %v177_v39, %v173_v38  ;;  %v68_v38 = vand.u32 127, %v67_v29 }
  0xa4   :  { %v179_v43 = vadd.s32 %v178_v42, %v174_v41 }
  0xa5   :  { %vm236_vm3 = vcmp.lt.s32.totalorder %v68_v38, 6  ;;  %vm80_vm8 = vcmp.lt.s32.totalorder %v68_v38, 3 }
  0xa6   :  { %v180_v35 = vadd.s32 536870912, %v179_v43 }
  0xa8   :  { %v181_v36 = vshrl.u32 %v180_v35, 30 }
  0xaa   :  { %v182_v47 = vshll.u32 %v181_v36, 30  ;;  %v205_v6 = vsub.s32 4, %v181_v36 }
  0xac   :  { %v183_v48 = vsub.s32 %v179_v43, %v182_v47  ;;  %v206_v13 = vsel %vm83_vm13, %v205_v6, %v181_v36  ;;  %v649_v43 = vmov 0.0  }
  0xad   :  { %v208_v17 = vsel %vm82_vm14, 0, %v206_v13  ;;  %v79_v35 = vsel %vm78_vm15, 1.0, %v649_v43 }
  0xae   :  { %vm184_vm11 = vcmp.lt.s32.totalorder %v183_v48, 0  ;;  %v185_v18 = vsub.s32 0, %v183_v48  ;;  %v225_v31 = vadd.s32 3, %v208_v17  ;;  %v381_v16 = vand.u32 3, %v208_v17 }
  0xb0   :  { %v186_v49 = vsel %vm184_vm11, %v185_v18, %v183_v48  ;;  %v226_v39 = vand.u32 3, %v225_v31  ;;  %vm382_vm0 = vcmp.lt.s32.totalorder %v381_v16, 2  ;;  %vm383_vm1 = vcmp.eq.s32.totalorder %v381_v16, 0 }
  0xb1   :  { %v187_v50 = vclz %v186_v49  ;;  %vm386_vm2 = vcmp.eq.s32.totalorder %v381_v16, 2 }
  0xb2   :  { %vm227_vm4 = vcmp.lt.s32.totalorder %v226_v39, 2  ;;  %vm228_vm5 = vcmp.eq.s32.totalorder %v226_v39, 0  ;;  %vm231_vm6 = vcmp.eq.s32.totalorder %v226_v39, 2 }
  0xb3   :  { %v588_v51 = vadd.s32 4294967294, %v187_v50 }
  0xb5   :  { %vm589_vm12 = vcmp.lt.s32.totalorder %v588_v51, 0 }
  0xb6   :  { %v190_v52 = vsel %vm589_vm12, 0, %v588_v51 }
  0xb7   :  { %v191_v53 = vsub.s32 32, %v190_v52  ;;  %v195_v54 = vsub.s32 4294967266, %v190_v52  ;;  %v192_v55 = vshll.u32 %v183_v48, %v190_v52 }
  0xb9   :  { %v193_v56 = vshrl.u32 %v175_v40, %v191_v53  ;;  %v196_v57 = vadd.s32 127, %v195_v54  ;;  %v611_v40 = vld [vmem:[#allocation2 + $0x2] ss:$0 sm:$0xff] }
  0xbb   :  { %v194_v59 = vor.u32 %v193_v56, %v192_v55  ;;  %v197_v60 = vshll.u32 %v196_v57, 23 }
  0xbd   :  { %v198_v63 = vor.u32 4788187, %v197_v60  ;;  %v201_v2 = vcvt.s32.f32 %v194_v59 }
  0xbf   :  { %v199_v1 = vand.u32 2147483647, %v198_v63 }
  0xc1   :  { %v202_v3 = vmul.f32 %v201_v2, %v199_v1 }
  0xc3   :  { %v203_v4 = vxor.u32 2147483648, %v202_v3 }
  0xc5   :  { %v204_v5 = vsel %vm83_vm13, %v203_v4, %v202_v3 }
  0xc6   :  { %v207_v8 = vsel %vm82_vm14, %v680_v7, %v204_v5 }
  0xc7   :  { %v209_v9 = vmul.f32 %v207_v8, %v207_v8 }
  0xc9   :  { %v210_v10 = vmul.f32 -0.001358992, %v209_v9  ;;  %v217_v12 = vmul.f32 -0.00019511016, %v209_v9 }
  0xcb   :  { %v211_v14 = vadd.f32 0.041655596, %v210_v10  ;;  %v218_v15 = vadd.f32 0.008332121, %v217_v12 }
  0xcd   :  { %v212_v20 = vmul.f32 %v211_v14, %v209_v9  ;;  %v219_v22 = vmul.f32 %v218_v15, %v209_v9 }
  0xcf   :  { %v213_v25 = vadd.f32 -0.4999988, %v212_v20  ;;  %v220_v26 = vadd.f32 -0.16666654, %v219_v22 }
  0xd1   :  { %v214_v11 = vmul.f32 %v213_v25, %v209_v9  ;;  %v221_v32 = vmul.f32 %v220_v26, %v209_v9 }
  0xd3   :  { %v215_v34 = vadd.f32 1.0, %v214_v11  ;;  %v222_v37 = vadd.f32 1.0, %v221_v32 }
  0xd5   :  { %v223_v41 = vmul.f32 %v222_v37, %v207_v8  ;;  %v232_v42 = vxor.u32 2147483648, %v215_v34 }
  0xd7   :  { %v229_v44 = vxor.u32 2147483648, %v223_v41  ;;  %v388_v36 = vsel %vm386_vm2, %v232_v42, %v223_v41  ;;  %v233_v47 = vsel %vm231_vm6, %v232_v42, %v223_v41 }
  0xd9   :  { %v385_v45 = vsel %vm383_vm1, %v215_v34, %v229_v44  ;;  %v230_v46 = vsel %vm228_vm5, %v215_v34, %v229_v44 }
  0xda   :  { %v389_v48 = vsel %vm382_vm0, %v385_v45, %v388_v36  ;;  %v234_v18 = vsel %vm227_vm4, %v230_v46, %v233_v47 }
  0xdb   :  { %v390_v49 = vsel %vm224_vm7, nan, %v389_v48  ;;  %v235_v50 = vsel %vm224_vm7, nan, %v234_v18 }
  0xdc   :  { %v391_v51 = vsel %vm236_vm3, %v390_v49, %v79_v35 }
  0xdd   :  { %v392_v52 = vsel %vm80_vm8, %v235_v50, %v391_v51 }
  0xde   :  { %593 = vmatmul.msk.f32.vlgmr.msra.gmra.mxu1 %vm394_vm9, %v392_v52 }
 0x15b   :  { %v415_v53 = vpop.f32.mrf.mxu1 }
 0x15c   :  { %v749_v54 = vadd.f32 %v611_v40, %v415_v53 }
 0x15e   :  { %v421_v55 = vand.u32 2139095040, %v749_v54  ;;  %v418_v58 = vand.u32 2147483647, %v749_v54  ;;  %vm420_vm6 = vcmp.lt.s32.totalorder %v749_v54, 0 }
 0x160   :  { %v422_v56 = vshrl.u32 %v421_v55, 23  ;;  %v425_v59 = vand.u32 8388607, %v418_v58  ;;  %vm808_vm7 = vcmp.le.f32.partialorder %v418_v58, 0.7853982 }
 0x162   :  { %v594_v57 = vadd.s32 4294967169, %v422_v56  ;;  %v426_v63 = vor.u32 8388608, %v425_v59 }
 0x164   :  { %v428_v7 = vadd.s32 1, %v594_v57 }
 0x166   :  { %vm429_vm10 = vcmp.gt.s32.totalorder %v428_v7, 0 }
 0x167   :  { %v430_v60 = vsel %vm429_vm10, %v428_v7, 0 }
 0x168   :  { %v432_v61 = vand.u32 31, %v430_v60  ;;  %v755_v1 = vshrl.u32 %v430_v60, 5 }
 0x16a   :  { %v433_v62 = vsub.s32 32, %v432_v61  ;;  %v435_v2 = vshll.u32 %v643_v19, %v432_v61  ;;  %v438_v3 = vshll.u32 %v644_v21, %v432_v61  ;;  %v441_v6 = vshll.u32 %v645_v24, %v432_v61 }
 0x16b   :  { %v444_v9 = vshll.u32 %v646_v27, %v432_v61  ;;  %v447_v12 = vshll.u32 %v647_v30, %v432_v61  ;;  %vm450_vm11 = vcmp.lt.s32.totalorder %v755_v1, 1  ;;  %vm453_vm12 = vcmp.lt.s32.totalorder %v755_v1, 4 }
 0x16c   :  { %v436_v4 = vshrl.u32 %v644_v21, %v433_v62  ;;  %v439_v5 = vshrl.u32 %v645_v24, %v433_v62  ;;  %v442_v8 = vshrl.u32 %v646_v27, %v433_v62  ;;  %v445_v10 = vshrl.u32 %v647_v30, %v433_v62 }
 0x16d   :  { %v448_v13 = vshrl.u32 %v648_v33, %v433_v62  ;;  %v768_v21 = vshll.u32 %v426_v63, 8  ;;  %vm452_vm13 = vcmp.lt.s32.totalorder %v755_v1, 3  ;;  %vm451_vm14 = vcmp.lt.s32.totalorder %v755_v1, 2 }
 0x16e   :  { %v437_v14 = vor.u32 %v436_v4, %v435_v2  ;;  %v440_v15 = vor.u32 %v439_v5, %v438_v3  ;;  %v443_v17 = vor.u32 %v442_v8, %v441_v6  ;;  %v446_v20 = vor.u32 %v445_v10, %v444_v9 }
 0x16f   :  { %v449_v22 = vor.u32 %v448_v13, %v447_v12  ;;  %v467_v29 = vand.u32 65535, %v768_v21  ;;  %v468_v31 = vshrl.u32 %v768_v21, 16  ;;  %v434_v55 = vshrl.u32 %v643_v19, %v433_v62 }
 0x170   :  { %v458_v24 = vsel %vm450_vm11, %v437_v14, %v440_v15  ;;  %v462_v27 = vsel %vm450_vm11, %v440_v15, %v443_v17  ;;  %v459_v30 = vsel %vm453_vm12, %v446_v20, 920167782  ;;  %v455_v52 = vsel %vm453_vm12, %v443_v17, 2102212464 }
 0x171   :  { %v463_v33 = vsel %vm453_vm12, %v449_v22, 1326507024  ;;  %v460_v23 = vsel %vm452_vm13, %v443_v17, %v459_v30  ;;  %v454_v61 = vsel %vm450_vm11, %v434_v55, %v437_v14  ;;  %v456_v63 = vsel %vm452_vm13, %v440_v15, %v455_v52 }
 0x172   :  { %v464_v25 = vsel %vm452_vm13, %v446_v20, %v463_v33  ;;  %v461_v26 = vsel %vm451_vm14, %v458_v24, %v460_v23  ;;  %v457_v19 = vsel %vm451_vm14, %v454_v61, %v456_v63  ;;  %vm561_vm11 = vweird.f32 %v749_v54 }
 0x173   :  { %v465_v28 = vsel %vm451_vm14, %v462_v27, %v464_v25  ;;  %v491_v34 = vand.u32 65535, %v461_v26  ;;  %v492_v37 = vshrl.u32 %v461_v26, 16  ;;  %v511_v9 = vmul.u32 %v768_v21, %v457_v19 }
 0x174   :  { %v469_v11 = vand.u32 65535, %v465_v28  ;;  %v470_v32 = vshrl.u32 %v465_v28, 16  ;;  %vm575_vm12 = vcmask 254976   ;;  %vm579_vm13 = vcmask 1024  }
 0x175   :  { %v494_v39 = vmul.u32 %v492_v37, %v467_v29  ;;  %v495_v41 = vmul.u32 %v491_v34, %v468_v31  ;;  %v493_v44 = vmul.u32 %v491_v34, %v467_v29  ;;  %v496_v47 = vmul.u32 %v492_v37, %v468_v31 }
 0x176   :  { %v472_v16 = vmul.u32 %v470_v32, %v467_v29  ;;  %v473_v38 = vmul.u32 %v469_v11, %v468_v31  ;;  %v471_v42 = vmul.u32 %v469_v11, %v467_v29  ;;  %v474_v35 = vmul.u32 %v470_v32, %v468_v31 }
 0x177   :  { %v497_v45 = vshll.u32 %v494_v39, 16  ;;  %v499_v18 = vshll.u32 %v495_v41, 16  ;;  %v498_v59 = vshrl.u32 %v494_v39, 16  ;;  %v500_v4 = vshrl.u32 %v495_v41, 16 }
 0x178   :  { %v475_v43 = vshll.u32 %v472_v16, 16  ;;  %v477_v36 = vshll.u32 %v473_v38, 16  ;;  %v476_v56 = vshrl.u32 %v472_v16, 16  ;;  %v478_v2 = vshrl.u32 %v473_v38, 16 }
 0x179   :  { %vm501_vm0 = vc.u32 %v493_v44, %v497_v45  ;;  %v503_v49 = vadd.s32 %v497_v45, %v493_v44 }
 0x17a   :  { %vm479_vm15 = vc.u32 %v471_v42, %v475_v43  ;;  %v481_v46 = vadd.s32 %v475_v43, %v471_v42  ;;  %v502_v51 = vsel %vm501_vm0, 1, %v642_v0 }
 0x17b   :  { %v480_v48 = vsel %vm479_vm15, 1, %v642_v0  ;;  %v504_v53 = vadd.s32 %v502_v51, %v496_v47  ;;  %vm505_vm2 = vc.u32 %v503_v49, %v499_v18  ;;  %v507_v8 = vadd.s32 %v503_v49, %v499_v18 }
 0x17c   :  { %v482_v50 = vadd.s32 %v480_v48, %v474_v35  ;;  %vm483_vm1 = vc.u32 %v481_v46, %v477_v36  ;;  %v506_v7 = vsel %vm505_vm2, 1, %v642_v0 }
 0x17d   :  { %v484_v40 = vsel %vm483_vm1, 1, %v642_v0  ;;  %v508_v60 = vadd.s32 %v506_v7, %v504_v53 }
 0x17e   :  { %v486_v57 = vadd.s32 %v484_v40, %v482_v50 }
 0x17f   :  { %v509_v5 = vadd.s32 %v508_v60, %v498_v59  ;;  %v612_v60 = vld [vmem:[#allocation2 + $0x3] ss:$0 sm:$0xff] }
 0x180   :  { %v487_v3 = vadd.s32 %v486_v57, %v476_v56 }
 0x181   :  { %v510_v62 = vadd.s32 %v509_v5, %v500_v4 }
 0x182   :  { %v488_v6 = vadd.s32 %v487_v3, %v478_v2 }
 0x183   :  { %v514_v0 = vadd.s32 1, %v510_v62 }
 0x184   :  { %vm513_vm3 = vc.u32 %v488_v6, %v507_v8  ;;  %v512_v1 = vadd.s32 %v507_v8, %v488_v6 }
 0x185   :  { %v515_v10 = vsel %vm513_vm3, %v514_v0, %v510_v62 }
 0x186   :  { %v516_v12 = vadd.s32 %v515_v10, %v511_v9 }
 0x188   :  { %v517_v13 = vadd.s32 536870912, %v516_v12 }
 0x18a   :  { %v518_v14 = vshrl.u32 %v517_v13, 30 }
 0x18c   :  { %v519_v17 = vshll.u32 %v518_v14, 30  ;;  %v542_v35 = vsub.s32 4, %v518_v14 }
 0x18e   :  { %v520_v15 = vsub.s32 %v516_v12, %v519_v17  ;;  %v543_v47 = vsel %vm420_vm6, %v542_v35, %v518_v14 }
 0x18f   :  { %v545_v58 = vsel %vm808_vm7, 0, %v543_v47 }
 0x190   :  { %vm521_vm4 = vcmp.lt.s32.totalorder %v520_v15, 0  ;;  %v522_v20 = vsub.s32 0, %v520_v15  ;;  %v562_v40 = vand.u32 3, %v545_v58 }
 0x192   :  { %v523_v22 = vsel %vm521_vm4, %v522_v20, %v520_v15  ;;  %vm564_vm8 = vcmp.eq.s32.totalorder %v562_v40, 0  ;;  %vm567_vm9 = vcmp.eq.s32.totalorder %v562_v40, 2  ;;  %vm563_vm10 = vcmp.lt.s32.totalorder %v562_v40, 2 }
 0x193   :  { %v524_v24 = vclz %v523_v22 }
 0x195   :  { %v595_v27 = vadd.s32 4294967294, %v524_v24 }
 0x197   :  { %vm596_vm5 = vcmp.lt.s32.totalorder %v595_v27, 0 }
 0x198   :  { %v527_v30 = vsel %vm596_vm5, 0, %v595_v27 }
 0x199   :  { %v528_v33 = vsub.s32 32, %v527_v30  ;;  %v532_v23 = vsub.s32 4294967266, %v527_v30  ;;  %v529_v25 = vshll.u32 %v520_v15, %v527_v30 }
 0x19b   :  { %v530_v26 = vshrl.u32 %v512_v1, %v528_v33  ;;  %v533_v28 = vadd.s32 127, %v532_v23 }
 0x19d   :  { %v531_v21 = vor.u32 %v530_v26, %v529_v25  ;;  %v534_v29 = vshll.u32 %v533_v28, 23 }
 0x19f   :  { %v535_v31 = vor.u32 4788187, %v534_v29  ;;  %v538_v32 = vcvt.s32.f32 %v531_v21 }
 0x1a1   :  { %v536_v11 = vand.u32 2147483647, %v535_v31 }
 0x1a3   :  { %v539_v34 = vmul.f32 %v538_v32, %v536_v11 }
 0x1a5   :  { %v540_v37 = vxor.u32 2147483648, %v539_v34 }
 0x1a7   :  { %v541_v38 = vsel %vm420_vm6, %v540_v37, %v539_v34 }
 0x1a8   :  { %v544_v39 = vsel %vm808_vm7, %v749_v54, %v541_v38 }
 0x1a9   :  { %v546_v41 = vmul.f32 %v544_v39, %v544_v39 }
 0x1ab   :  { %v547_v42 = vmul.f32 -0.001358992, %v546_v41  ;;  %v554_v43 = vmul.f32 -0.00019511016, %v546_v41 }
 0x1ad   :  { %v548_v44 = vadd.f32 0.041655596, %v547_v42  ;;  %v555_v45 = vadd.f32 0.008332121, %v554_v43 }
 0x1af   :  { %v549_v36 = vmul.f32 %v548_v44, %v546_v41  ;;  %v556_v46 = vmul.f32 %v555_v45, %v546_v41 }
 0x1b1   :  { %v550_v48 = vadd.f32 -0.4999988, %v549_v36  ;;  %v557_v18 = vadd.f32 -0.16666654, %v556_v46 }
 0x1b3   :  { %v551_v49 = vmul.f32 %v550_v48, %v546_v41  ;;  %v558_v50 = vmul.f32 %v557_v18, %v546_v41 }
 0x1b5   :  { %v552_v51 = vadd.f32 1.0, %v551_v49  ;;  %v559_v52 = vadd.f32 1.0, %v558_v50 }
 0x1b7   :  { %v560_v53 = vmul.f32 %v559_v52, %v544_v39  ;;  %v568_v55 = vxor.u32 2147483648, %v552_v51 }
 0x1b9   :  { %v565_v56 = vxor.u32 2147483648, %v560_v53  ;;  %v569_v7 = vsel %vm567_vm9, %v568_v55, %v560_v53 }
 0x1bb   :  { %v566_v57 = vsel %vm564_vm8, %v552_v51, %v565_v56 }
 0x1bc   :  { %v570_v59 = vsel %vm563_vm10, %v566_v57, %v569_v7 }
 0x1bd   :  { %v571_v61 = vsel %vm561_vm11, nan, %v570_v59 }
 0x1be   :  { %v572_v63 = vmul.f32 0.25, %v571_v61 }
 0x1c0   :  { %v574_v2 = vmul.f32 %v612_v60, %v572_v63 }
 0x1c2   :  { %v576_v3 = vsel %vm575_vm12, %v574_v2, 0.0 }
 0x1c3   :  { %577 = vadd.xlane.f32.xlu0 %v576_v3 }
 0x236   :  { %v578_v4 = vpop.xlane.xlu0 %577 }
 0x237   :  { %580 = vst.msk [vmem:[%s824_s3] sm:$0x3] %vm579_vm13, %v578_v4 }
 0x238   :  { %585 = vsyncpa [#allocation3], 1 }

</bundles_post_ra>
